<compile_context>
chip_gen: v7x
topology: tpu7x:2x2x1
jax: 0.10.0
libtpu: 0.0.40
codegen_flags: <defaults>
</compile_context>

<pallas_src>
import jax
import jax.numpy as jnp
import numpy as np
from jax import lax
from jax.experimental import pallas as pl
from jax.experimental.pallas import tpu as pltpu


_DN_NT = (((1,), (0,)), ((), ()))   # contract lhs dim 1 with rhs dim 0   (A @ B)
_DN_TT = (((1,), (1,)), ((), ()))   # contract last dims of both          (A @ B.T, no vxpose)


def _log_sigmoid(x):
    # stable logsigmoid: min(x, 0) - log1p(exp(-|x|))   (exp/log1p run on the EUP slot)
    return jnp.minimum(x, 0.0) - jnp.log1p(jnp.exp(-jnp.abs(x)))


def _line_loss_kernel(u_ref, ctx_ref, sidx_ref, ridxu_ref, ridxc_ref,
                      sign_ref, weight_ref, loss_ref):
    W, _ = u_ref.shape          # (word_size, dim)
    B = sidx_ref.shape[0]       # batch
    R = ridxu_ref.shape[0]      # padded RHS rows (multiple of 128)

    u = u_ref[...]              # u_emd.weight        (whole table, bulk DMA'd to VMEM)
    c = ctx_ref[...]            # context_emd.weight

    # ---- In-VMEM row gather via one-hot selection matmuls (no per-row DMAs) ----
    # RHS row layout: [u(t) | ctx(t) | u(ng) | ctx(ng) | zero pad] -> (R, D).
    # ridx_u / ridx_c hold the word index for rows sourced from that table and
    # -1 elsewhere, so the one-hot row is all zeros where the table is unused.
    col_r = lax.broadcasted_iota(jnp.int32, (R, W), 1)
    sel_u = jnp.where(col_r == ridxu_ref[...], 1.0, 0.0)          # (R, W)
    sel_c = jnp.where(col_r == ridxc_ref[...], 1.0, 0.0)          # (R, W)
    rhs = (lax.dot_general(sel_u, u, _DN_NT, preferred_element_type=jnp.float32)
           + lax.dot_general(sel_c, c, _DN_NT, preferred_element_type=jnp.float32))   # (R, D)

    col_b = lax.broadcasted_iota(jnp.int32, (B, W), 1)
    sel_s = jnp.where(col_b == sidx_ref[...], 1.0, 0.0)           # (B, W)
    vi = lax.dot_general(sel_s, u, _DN_NT, preferred_element_type=jnp.float32)        # (B, D)

    # ---- One fused, lane-dense (B, R=128k) score matmul: bf16 operands, f32 acc ----
    scores = lax.dot_general(vi.astype(jnp.bfloat16), rhs.astype(jnp.bfloat16),
                             _DN_TT, preferred_element_type=jnp.float32)              # (B, R)

    # sign: +1 on positive columns, -1 on negative columns (padding irrelevant).
    # weight: 1/B^2 on positive columns, 1/B on row b's own negative-sample
    #         columns, 0 elsewhere — exactly the PyTorch broadcast-mean weights.
    ls = _log_sigmoid(scores * sign_ref[...])
    loss_ref[0, 0] = -jnp.sum(weight_ref[...] * ls)


def line_forward(u_weight, ctx_weight, s, t, ng):
    """JAX/Pallas equivalent of Line.forward(s, t, ng) -> scalar loss."""
    B = int(s.shape[0])
    K = int(ng.shape[1])
    W, D = u_weight.shape
    BK = B * K
    n_rhs = 2 * B + 2 * BK
    # Pad RHS rows to a multiple of 128 so the (B, R) score output is lane-dense.
    R = max(128, ((n_rhs + 127) // 128) * 128)

    s_idx = s.astype(jnp.int32).reshape(B, 1)
    t_i = t.astype(jnp.int32)
    ng_i = ng.reshape(BK).astype(jnp.int32)
    neg1_b = jnp.full((B,), -1, jnp.int32)
    neg1_bk = jnp.full((BK,), -1, jnp.int32)
    pad = jnp.full((R - n_rhs,), -1, jnp.int32)
    ridx_u = jnp.concatenate([t_i, neg1_b, ng_i, neg1_bk, pad]).reshape(R, 1)
    ridx_c = jnp.concatenate([neg1_b, t_i, neg1_bk, ng_i, pad]).reshape(R, 1)

    # Static (numpy, shape-only) sign / mean-weight masks — no int %// in-kernel.
    sign = np.full((B, R), -1.0, dtype=np.float32)
    sign[:, :2 * B] = 1.0
    weight = np.zeros((B, R), dtype=np.float32)
    weight[:, :2 * B] = 1.0 / (B * B)
    for b in range(B):
        weight[b, 2 * B + b * K: 2 * B + (b + 1) * K] = 1.0 / B
        weight[b, 2 * B + BK + b * K: 2 * B + BK + (b + 1) * K] = 1.0 / B

    vspec = pl.BlockSpec(memory_space=pltpu.MemorySpace.VMEM)
    loss = pl.pallas_call(
        _line_loss_kernel,
        out_shape=jax.ShapeDtypeStruct((1, 1), jnp.float32),
        in_specs=[vspec] * 7,
        out_specs=pl.BlockSpec(memory_space=pltpu.MemorySpace.SMEM),
    )(u_weight.astype(jnp.float32), ctx_weight.astype(jnp.float32),
      s_idx, ridx_u, ridx_c, jnp.asarray(sign), jnp.asarray(weight))
    return loss[0, 0]


def line_forward_ref(u_weight, ctx_weight, s, t, ng):
    """Pure-JAX reference mirroring the PyTorch module line-by-line."""
    vi = u_weight[s]
    vo1 = u_weight[t]
    vng1 = u_weight[ng]
    o11 = jax.nn.log_sigmoid(vi @ vo1.T)
    o12 = jnp.sum(jax.nn.log_sigmoid(-jnp.einsum("bd,bkd->bk", vi, vng1)), axis=1)
    out1 = -(o11 + o12)
    vo2 = ctx_weight[t]
    vng2 = ctx_weight[ng]
    o21 = jax.nn.log_sigmoid(vi @ vo2.T)
    o22 = jnp.sum(jax.nn.log_sigmoid(-jnp.einsum("bd,bkd->bk", vi, vng2)), axis=1)
    out2 = -(o21 + o22)
    return jnp.mean(out1) + jnp.mean(out2)


if __name__ == "__main__":
    # Small, deterministic problem: word_size=64, dim=128, batch=8, neg samples=4
    word_size, dim = 64, 128
    B, K = 8, 4

    key = jax.random.PRNGKey(0)
    k_w, k_c, k_s, k_t, k_ng = jax.random.split(key, 5)

    # Parameter init matching Line.__init__:
    #   u_emd.weight ~ U(-0.5/dim, 0.5/dim); context_emd.weight = 0
    initrange = 0.5 / dim
    u_weight = jax.random.uniform(
        k_w, (word_size, dim), minval=-initrange, maxval=initrange, dtype=jnp.float32
    )
    ctx_zero = jnp.zeros((word_size, dim), dtype=jnp.float32)           # module init
    ctx_rand = jax.random.uniform(                                      # extra coverage
        k_c, (word_size, dim), minval=-initrange, maxval=initrange, dtype=jnp.float32
    )

    s = jax.random.randint(k_s, (B,), 0, word_size, dtype=jnp.int32)
    t = jax.random.randint(k_t, (B,), 0, word_size, dtype=jnp.int32)
    ng = jax.random.randint(k_ng, (B, K), 0, word_size, dtype=jnp.int32)

    for ctx_weight in (ctx_zero, ctx_rand):
        loss = jax.block_until_ready(line_forward(u_weight, ctx_weight, s, t, ng))
        loss_ref = jax.block_until_ready(line_forward_ref(u_weight, ctx_weight, s, t, ng))
        # rtol loosened to 1e-4: the score matmul uses bf16 MXU operands (f32 acc).
        np.testing.assert_allclose(
            np.asarray(loss), np.asarray(loss_ref), rtol=1e-4, atol=1e-6
        )
    print("KERNEL_OK")
</pallas_src>

<mosaic_0001>
module attributes {stable_mosaic.version = 11 : i64} {
  func.func @_line_loss_kernel(%arg0: memref<64x128xf32, #tpu.memory_space<vmem>>, %arg1: memref<64x128xf32, #tpu.memory_space<vmem>>, %arg2: memref<8x1xi32, #tpu.memory_space<vmem>>, %arg3: memref<128x1xi32, #tpu.memory_space<vmem>>, %arg4: memref<128x1xi32, #tpu.memory_space<vmem>>, %arg5: memref<8x128xf32, #tpu.memory_space<vmem>>, %arg6: memref<8x128xf32, #tpu.memory_space<vmem>>, %arg7: memref<1x1xf32, #tpu.memory_space<smem>>) attributes {dimension_semantics = [], scalar_prefetch = 0 : i64, scratch_operands = 0 : i64, tpu.core_type = #tpu.core_type<tc>} {
    %c0 = arith.constant 0 : index
    %c0_0 = arith.constant 0 : index
    %0 = vector.load %arg0[%c0, %c0_0] : memref<64x128xf32, #tpu.memory_space<vmem>>, vector<64x128xf32>
    %c0_1 = arith.constant 0 : index
    %c0_2 = arith.constant 0 : index
    %1 = vector.load %arg1[%c0_1, %c0_2] : memref<64x128xf32, #tpu.memory_space<vmem>>, vector<64x128xf32>
    %2 = tpu.iota {dimensions = array<i32: 1>} : vector<128x64xi32>
    %c0_3 = arith.constant 0 : index
    %c0_4 = arith.constant 0 : index
    %3 = vector.load %arg3[%c0_3, %c0_4] : memref<128x1xi32, #tpu.memory_space<vmem>>, vector<128x1xi32>
    %4 = vector.broadcast %3 : vector<128x1xi32> to vector<128x64xi32>
    %5 = arith.cmpi eq, %2, %4 : vector<128x64xi32>
    %cst = arith.constant 1.000000e+00 : f32
    %cst_5 = arith.constant 0.000000e+00 : f32
    %6 = vector.broadcast %cst : f32 to vector<128x64xf32>
    %7 = vector.broadcast %cst_5 : f32 to vector<128x64xf32>
    %8 = arith.select %5, %6, %7 : vector<128x64xi1>, vector<128x64xf32>
    %c0_6 = arith.constant 0 : index
    %c0_7 = arith.constant 0 : index
    %9 = vector.load %arg4[%c0_6, %c0_7] : memref<128x1xi32, #tpu.memory_space<vmem>>, vector<128x1xi32>
    %10 = vector.broadcast %9 : vector<128x1xi32> to vector<128x64xi32>
    %11 = arith.cmpi eq, %2, %10 : vector<128x64xi32>
    %cst_8 = arith.constant 1.000000e+00 : f32
    %cst_9 = arith.constant 0.000000e+00 : f32
    %12 = vector.broadcast %cst_8 : f32 to vector<128x64xf32>
    %13 = vector.broadcast %cst_9 : f32 to vector<128x64xf32>
    %14 = arith.select %11, %12, %13 : vector<128x64xi1>, vector<128x64xf32>
    %cst_10 = arith.constant dense<0.000000e+00> : vector<128x128xf32>
    %15 = tpu.matmul %8, %0, %cst_10 {dimension_numbers = #tpu.dot_dimension_numbers<[1], [0], [0], [1], [0, 0, 1, 1], [], []>} : vector<128x64xf32>, vector<64x128xf32>, vector<128x128xf32> -> vector<128x128xf32>
    %cst_11 = arith.constant dense<0.000000e+00> : vector<128x128xf32>
    %16 = tpu.matmul %14, %1, %cst_11 {dimension_numbers = #tpu.dot_dimension_numbers<[1], [0], [0], [1], [0, 0, 1, 1], [], []>} : vector<128x64xf32>, vector<64x128xf32>, vector<128x128xf32> -> vector<128x128xf32>
    %17 = arith.addf %15, %16 : vector<128x128xf32>
    %18 = tpu.iota {dimensions = array<i32: 1>} : vector<8x64xi32>
    %c0_12 = arith.constant 0 : index
    %c0_13 = arith.constant 0 : index
    %19 = vector.load %arg2[%c0_12, %c0_13] : memref<8x1xi32, #tpu.memory_space<vmem>>, vector<8x1xi32>
    %20 = vector.broadcast %19 : vector<8x1xi32> to vector<8x64xi32>
    %21 = arith.cmpi eq, %18, %20 : vector<8x64xi32>
    %cst_14 = arith.constant 1.000000e+00 : f32
    %cst_15 = arith.constant 0.000000e+00 : f32
    %22 = vector.broadcast %cst_14 : f32 to vector<8x64xf32>
    %23 = vector.broadcast %cst_15 : f32 to vector<8x64xf32>
    %24 = arith.select %21, %22, %23 : vector<8x64xi1>, vector<8x64xf32>
    %cst_16 = arith.constant dense<0.000000e+00> : vector<8x128xf32>
    %25 = tpu.matmul %24, %0, %cst_16 {dimension_numbers = #tpu.dot_dimension_numbers<[1], [0], [0], [1], [0, 0, 1, 1], [], []>} : vector<8x64xf32>, vector<64x128xf32>, vector<8x128xf32> -> vector<8x128xf32>
    %26 = arith.truncf %25 : vector<8x128xf32> to vector<8x128xbf16>
    %27 = arith.truncf %17 : vector<128x128xf32> to vector<128x128xbf16>
    %cst_17 = arith.constant dense<0.000000e+00> : vector<8x128xf32>
    %28 = tpu.matmul %26, %27, %cst_17 {dimension_numbers = #tpu.dot_dimension_numbers<[1], [1], [0], [0], [0, 0, 1, 0], [], []>} : vector<8x128xbf16>, vector<128x128xbf16>, vector<8x128xf32> -> vector<8x128xf32>
    %c0_18 = arith.constant 0 : index
    %c0_19 = arith.constant 0 : index
    %29 = vector.load %arg5[%c0_18, %c0_19] : memref<8x128xf32, #tpu.memory_space<vmem>>, vector<8x128xf32>
    %30 = arith.mulf %28, %29 : vector<8x128xf32>
    %cst_20 = arith.constant 0.000000e+00 : f32
    %31 = vector.broadcast %cst_20 : f32 to vector<8x128xf32>
    %32 = arith.minimumf %30, %31 : vector<8x128xf32>
    %33 = math.absf %30 : vector<8x128xf32>
    %cst_21 = arith.constant 0.000000e+00 : f32
    %34 = vector.broadcast %cst_21 : f32 to vector<8x128xf32>
    %35 = arith.subf %34, %33 : vector<8x128xf32>
    %36 = math.exp %35 : vector<8x128xf32>
    %37 = math.log1p %36 : vector<8x128xf32>
    %38 = arith.subf %32, %37 : vector<8x128xf32>
    %c0_22 = arith.constant 0 : index
    %c0_23 = arith.constant 0 : index
    %39 = vector.load %arg6[%c0_22, %c0_23] : memref<8x128xf32, #tpu.memory_space<vmem>>, vector<8x128xf32>
    %40 = arith.mulf %39, %38 : vector<8x128xf32>
    %41 = vector.shape_cast %40 : vector<8x128xf32> to vector<1x8x128xf32>
    %cst_24 = arith.constant dense<0.000000e+00> : vector<1xf32>
    %42 = vector.multi_reduction <add>, %41, %cst_24 [1, 2] : vector<1x8x128xf32> to vector<1xf32>
    %43 = vector.shape_cast %42 : vector<1xf32> to vector<1x1x1xf32>
    %44 = vector.extract %43[0, 0, 0] : f32 from vector<1x1x1xf32>
    %cst_25 = arith.constant 0.000000e+00 : f32
    %45 = arith.subf %cst_25, %44 : f32
    %c0_26 = arith.constant 0 : index
    %c0_27 = arith.constant 0 : index
    %46 = memref.load %arg7[%c0_26, %c0_27] : memref<1x1xf32, #tpu.memory_space<smem>>
    memref.store %45, %arg7[%c0_26, %c0_27] : memref<1x1xf32, #tpu.memory_space<smem>>
    return
  }
}

</mosaic_0001>

<bundles_post_ra>
// kernel: tpu_custom_call.1
= control target key start
LH: loop header
LB: loop body
LE: loop exit
PB: predicated region body
PF: predicated region fallthrough
CT: control target
= control target key end

     0   :  { %v1100_v2 = vmov 0   ;;  %v1101_v5 = vmov 0.0   ;;  %s1447_s0 = inlined_call_operand.vmem [shape: f32[64,128], index: 0, kind: input, shape index: {}]   ;;  %s1448_s1 = inlined_call_operand.vmem [shape: f32[64,128], index: 1, kind: input, shape index: {}]   ;;  %s1449_s2 = inlined_call_operand.vmem [shape: s32[8,1], index: 2, kind: input, shape index: {}]   ;;  %s1450_s3 = inlined_call_operand.vmem [shape: s32[128,1], index: 3, kind: input, shape index: {}]   ;;  %s1451_s4 = inlined_call_operand.vmem [shape: s32[128,1], index: 4, kind: input, shape index: {}]   ;;  %s1452_s5 = inlined_call_operand.vmem [shape: f32[8,128], index: 5, kind: input, shape index: {}]   ;;  %s1453_s6 = inlined_call_operand.vmem [shape: f32[8,128], index: 6, kind: input, shape index: {}]   ;;  %s1454_s7 = inlined_call_operand.hbm [shape: f32[1,1], index: 7, kind: output, shape index: {}]  }
   0x1   :  { %v144_v0 = vld [vmem:[%s1451_s4 + $0x10] sm:$0xff]  ;;  %v142_v1 = vld [vmem:[%s1451_s4] sm:$0xff]  ;;  %1083 = vset.pattern.permute.xlu1 %v1100_v2  ;;  %1082 = vset.pattern.permute.xlu0 %v1100_v2  ;;  %v145_v3 = vld [vmem:[%s1451_s4 + $0x18] sm:$0xff] }
   0x2   :  { %165 = vperm.xlu1 %1083, %v144_v0   ;;  %159 = vperm.xlu0 %1082, %v142_v1   ;;  %v143_v4 = vld [vmem:[%s1451_s4 + $0x8] sm:$0xff]  ;;  %v146_v7 = vld [vmem:[%s1451_s4 + $0x20] sm:$0xff]  ;;  %v149_v8 = vld [vmem:[%s1451_s4 + $0x38] sm:$0xff] }
   0x3   :  { %995 = vmatprep.subr.bf16.mxu1 %v1101_v5  ;;  %v147_v6 = vld [vmem:[%s1451_s4 + $0x28] sm:$0xff]  ;;  %v148_v9 = vld [vmem:[%s1451_s4 + $0x30] sm:$0xff]  ;;  %v36_v10 = vld [vmem:[%s1448_s1] sm:$0xff] }
   0x4   :  { %v37_v11 = vld [vmem:[%s1448_s1 + $0x8] sm:$0xff]  ;;  %v38_v12 = vld [vmem:[%s1448_s1 + $0x10] sm:$0xff]  ;;  %v39_v14 = vld [vmem:[%s1448_s1 + $0x18] sm:$0xff] }
   0x5   :  { %v1015_v13 = vpack.c.bf16 %v37_v11, %v36_v10  ;;  %v1019_v15 = vpack.c.bf16 %v39_v14, %v38_v12  ;;  %v40_v16 = vld [vmem:[%s1448_s1 + $0x20] sm:$0xff]  ;;  %v41_v17 = vld [vmem:[%s1448_s1 + $0x28] sm:$0xff] }
   0x6   :  { %168 = vperm.xlu1 %1083, %v145_v3   ;;  %162 = vperm.xlu0 %1082, %v143_v4  }
   0xa   :  { %174 = vperm.xlu1 %1083, %v147_v6   ;;  %171 = vperm.xlu0 %1082, %v146_v7  }
   0xe   :  { %180 = vperm.xlu1 %1083, %v149_v8   ;;  %177 = vperm.xlu0 %1082, %v148_v9  }
   0xf   :  { %12 = vsyncpa [#allocation3], 0  ;;  %v151_v18 = vld [vmem:[%s1451_s4 + $0x48] sm:$0xff]  ;;  %v150_v19 = vld [vmem:[%s1451_s4 + $0x40] sm:$0xff]  ;;  %1016 = vmatprep.subr.bf16.mxu0 %v1015_v13  ;;  %v1023_v20 = vpack.c.bf16 %v41_v17, %v40_v16  ;;  %vm1102_vm0 = vmmov 0   ;;  %v44_v50 = vlaneseq  ;;  %vm238_vm1 = vcmask 523264  }
  0x10   :  { %1018 = vmatpush3.bf16.msra.mxu0 %v1015_v13  ;;  %v42_v21 = vld [vmem:[%s1448_s1 + $0x30] sm:$0xff]  ;;  %v43_v22 = vld [vmem:[%s1448_s1 + $0x38] sm:$0xff]  ;;  %v28_v26 = vld [vmem:[%s1447_s0] sm:$0xff]  ;;  %1011 = vmatprep.mubr.msk.bf16.mxu1 %vm1102_vm0, %v1101_v5  ;;  %s1088_s29 = scalar_lea.hbm %s1454_s7, 16 }
  0x11   :  { %1020 = vmatprep.subr.bf16.mxu0 %v1019_v15  ;;  %v153_v23 = vld [vmem:[%s1451_s4 + $0x58] sm:$0xff]  ;;  %v152_v24 = vld [vmem:[%s1451_s4 + $0x50] sm:$0xff]  ;;  %v1027_v25 = vpack.c.bf16 %v43_v22, %v42_v21  ;;  %v29_v27 = vld [vmem:[%s1447_s0 + $0x8] sm:$0xff]  ;;  %v1280_v51 = vand.u32 127, %v44_v50  ;;  %p1089_p0 = scmp.ne.s32.totalorder %s1454_s7, %s1088_s29  ;;  %p1092_p1 = scmp.lt.u32.totalorder %s1088_s29, %s1454_s7 }
  0x12   :  { %186 = vperm.xlu1 %1083, %v151_v18   ;;  %183 = vperm.xlu0 %1082, %v150_v19   ;;  %v155_v28 = vld [vmem:[%s1451_s4 + $0x68] sm:$0xff]  ;;  %v154_v29 = vld [vmem:[%s1451_s4 + $0x60] sm:$0xff]  ;;  %v1218_v30 = vpack.c.bf16 %v29_v27, %v28_v26  ;;  %v157_v31 = vld [vmem:[%s1451_s4 + $0x78] sm:$0xff]  ;;  %v1103_v19 = vmov 0.0|0.0  }
  0x13   :  { %v156_v32 = vld [vmem:[%s1451_s4 + $0x70] sm:$0xff]  ;;  %v47_v33 = vld [vmem:[%s1450_s3 + $0x8] sm:$0xff]  ;;  %v46_v34 = vld [vmem:[%s1450_s3] sm:$0xff]  ;;  %p1094_p2 = pnand %p1092_p1, %p1089_p0 }
  0x14   :  { %1022 = vmatpush3.bf16.msra.mxu0 %v1019_v15  ;;  %v49_v35 = vld [vmem:[%s1450_s3 + $0x18] sm:$0xff]  ;;  %v48_v36 = vld [vmem:[%s1450_s3 + $0x10] sm:$0xff]  ;;  %v51_v37 = vld [vmem:[%s1450_s3 + $0x28] sm:$0xff] }
  0x15   :  { %1024 = vmatprep.subr.bf16.mxu0 %v1023_v20  ;;  %v50_v38 = vld [vmem:[%s1450_s3 + $0x20] sm:$0xff]  ;;  %v53_v39 = vld [vmem:[%s1450_s3 + $0x38] sm:$0xff]  ;;  %v52_v40 = vld [vmem:[%s1450_s3 + $0x30] sm:$0xff] }
  0x16   :  { %192 = vperm.xlu1 %1083, %v153_v23   ;;  %189 = vperm.xlu0 %1082, %v152_v24   ;;  %v55_v41 = vld [vmem:[%s1450_s3 + $0x48] sm:$0xff]  ;;  %v54_v42 = vld [vmem:[%s1450_s3 + $0x40] sm:$0xff]  ;;  %v57_v43 = vld [vmem:[%s1450_s3 + $0x58] sm:$0xff] }
  0x17   :  { %v56_v44 = vld [vmem:[%s1450_s3 + $0x50] sm:$0xff]  ;;  %v59_v45 = vld [vmem:[%s1450_s3 + $0x68] sm:$0xff]  ;;  %v58_v46 = vld [vmem:[%s1450_s3 + $0x60] sm:$0xff] }
  0x18   :  { %1026 = vmatpush3.bf16.msra.mxu0 %v1023_v20  ;;  %v61_v47 = vld [vmem:[%s1450_s3 + $0x78] sm:$0xff]  ;;  %v60_v48 = vld [vmem:[%s1450_s3 + $0x70] sm:$0xff]  ;;  %v625_v49 = vld [vmem:[%s1449_s2] sm:$0xff] }
  0x19   :  { %1028 = vmatprep.subr.bf16.mxu0 %v1027_v25  ;;  %v30_v55 = vld [vmem:[%s1447_s0 + $0x10] sm:$0xff]  ;;  %v31_v56 = vld [vmem:[%s1447_s0 + $0x18] sm:$0xff]  ;;  %v32_v62 = vld [vmem:[%s1447_s0 + $0x20] sm:$0xff] }
  0x1a   :  { %198 = vperm.xlu1 %1083, %v155_v28   ;;  %195 = vperm.xlu0 %1082, %v154_v29   ;;  %v1294_v60 = vpack.c.bf16 %v31_v56, %v30_v55  ;;  %v33_v63 = vld [vmem:[%s1447_s0 + $0x28] sm:$0xff]  ;;  %v34_v6 = vld [vmem:[%s1447_s0 + $0x30] sm:$0xff]  ;;  %v35_v7 = vld [vmem:[%s1447_s0 + $0x38] sm:$0xff] }
  0x1b   :  { %v1309_v2 = vpack.c.bf16 %v33_v63, %v32_v62  ;;  %v1325_v10 = vpack.c.bf16 %v35_v7, %v34_v6 }
  0x1c   :  { %1030 = vmatpush3.bf16.msra.mxu0 %v1027_v25 }
  0x1d   :  { %1032 = vmatprep.subr.bf16.mxu0 %v1218_v30 }
  0x1e   :  { %204 = vperm.xlu1 %1083, %v157_v31   ;;  %201 = vperm.xlu0 %1082, %v156_v32  }
  0x22   :  { %66 = vperm.xlu1 %1083, %v47_v33   ;;  %63 = vperm.xlu0 %1082, %v46_v34  }
  0x26   :  { %72 = vperm.xlu1 %1083, %v49_v35   ;;  %69 = vperm.xlu0 %1082, %v48_v36  }
  0x2a   :  { %78 = vperm.xlu1 %1083, %v51_v37   ;;  %75 = vperm.xlu0 %1082, %v50_v38  }
  0x2e   :  { %84 = vperm.xlu1 %1083, %v53_v39   ;;  %81 = vperm.xlu0 %1082, %v52_v40  }
  0x32   :  { %90 = vperm.xlu1 %1083, %v55_v41   ;;  %87 = vperm.xlu0 %1082, %v54_v42  }
  0x36   :  { %96 = vperm.xlu1 %1083, %v57_v43   ;;  %93 = vperm.xlu0 %1082, %v56_v44  }
  0x3a   :  { %102 = vperm.xlu1 %1083, %v59_v45   ;;  %99 = vperm.xlu0 %1082, %v58_v46  }
  0x3e   :  { %108 = vperm.xlu1 %1083, %v61_v47   ;;  %105 = vperm.xlu0 %1082, %v60_v48  }
  0x42   :  { %627 = vperm.xlu0 %1082, %v625_v49  }
  0x81   :  { %v166_v52 = vpop.permute.xlu1 %165  ;;  %v160_v53 = vpop.permute.xlu0 %159 }
  0x82   :  { %vm206_vm2 = vcmp.eq.s32.totalorder %v1280_v51, %v160_v53  ;;  %vm208_vm3 = vcmp.eq.s32.totalorder %v1280_v51, %v166_v52 }
  0x83   :  { %v222_v54 = vsel %vm206_vm2, 1.0, %v1101_v5  ;;  %v224_v59 = vsel %vm208_vm3, 1.0, %v1101_v5 }
  0x84   :  { %912 = vmatprep.mubr.msk.f32.mxu0 %vm238_vm1, %v222_v54 }
  0x85   :  { %v169_v57 = vpop.permute.xlu1 %168  ;;  %v163_v58 = vpop.permute.xlu0 %162 }
  0x86   :  { %vm207_vm4 = vcmp.eq.s32.totalorder %v1280_v51, %v163_v58  ;;  %vm209_vm5 = vcmp.eq.s32.totalorder %v1280_v51, %v169_v57 }
  0x87   :  { %v223_v61 = vsel %vm207_vm4, 1.0, %v1101_v5  ;;  %v225_v3 = vsel %vm209_vm5, 1.0, %v1101_v5 }
  0x88   :  { %913 = vmatmul.mubr.msk.f32.vlgmr.msra.gmra.mrb[0].mxu0 %vm238_vm1, %v223_v61 }
  0x89   :  { %1034 = vmatpush3.bf16.msra.mxu0 %v1218_v30  ;;  %v175_v0 = vpop.permute.xlu1 %174  ;;  %v172_v1 = vpop.permute.xlu0 %171  ;;  %915 = vmatprep.mubr.msk.f32.mxu0 %vm238_vm1, %v224_v59 }
  0x8a   :  { %vm210_vm6 = vcmp.eq.s32.totalorder %v1280_v51, %v172_v1  ;;  %1036 = vmatprep.subr.bf16.mxu0 %v1294_v60  ;;  %vm211_vm7 = vcmp.eq.s32.totalorder %v1280_v51, %v175_v0 }
  0x8b   :  { %v226_v4 = vsel %vm210_vm6, 1.0, %v1101_v5  ;;  %v227_v11 = vsel %vm211_vm7, 1.0, %v1101_v5 }
  0x8c   :  { %916 = vmatmul.mubr.msk.f32.gmra.mrb[2].mxu0 %vm238_vm1, %v225_v3 }
  0x8d   :  { %v181_v8 = vpop.permute.xlu1 %180  ;;  %v178_v9 = vpop.permute.xlu0 %177  ;;  %918 = vmatprep.mubr.msk.f32.mxu0 %vm238_vm1, %v226_v4  ;;  %1038 = vmatpush3.bf16.msra.mxu0 %v1294_v60 }
  0x8e   :  { %vm212_vm8 = vcmp.eq.s32.totalorder %v1280_v51, %v178_v9  ;;  %1040 = vmatprep.subr.bf16.mxu0 %v1309_v2  ;;  %vm213_vm9 = vcmp.eq.s32.totalorder %v1280_v51, %v181_v8 }
  0x8f   :  { %v228_v12 = vsel %vm212_vm8, 1.0, %v1101_v5  ;;  %v229_v15 = vsel %vm213_vm9, 1.0, %v1101_v5 }
  0x90   :  { %919 = vmatmul.mubr.msk.f32.gmra.mrb[4].mxu0 %vm238_vm1, %v227_v11 }
  0x91   :  { %v187_v13 = vpop.permute.xlu1 %186  ;;  %v184_v14 = vpop.permute.xlu0 %183  ;;  %921 = vmatprep.mubr.msk.f32.mxu0 %vm238_vm1, %v228_v12  ;;  %1042 = vmatpush3.bf16.msra.mxu0 %v1309_v2 }
  0x92   :  { %vm214_vm10 = vcmp.eq.s32.totalorder %v1280_v51, %v184_v14  ;;  %1044 = vmatprep.subr.bf16.mxu0 %v1325_v10  ;;  %vm215_vm11 = vcmp.eq.s32.totalorder %v1280_v51, %v187_v13 }
  0x93   :  { %v230_v16 = vsel %vm214_vm10, 1.0, %v1101_v5  ;;  %v231_v20 = vsel %vm215_vm11, 1.0, %v1101_v5 }
  0x94   :  { %922 = vmatmul.mubr.msk.f32.gmra.mrb[6].mxu0 %vm238_vm1, %v229_v15 }
  0x95   :  { %v193_v17 = vpop.permute.xlu1 %192  ;;  %v190_v18 = vpop.permute.xlu0 %189  ;;  %924 = vmatprep.mubr.msk.f32.mxu0 %vm238_vm1, %v230_v16  ;;  %1046 = vmatpush3.bf16.msra.mxu0 %v1325_v10 }
  0x96   :  { %vm216_vm12 = vcmp.eq.s32.totalorder %v1280_v51, %v190_v18  ;;  %1047 = vmatprep.subr.bf16.mxu0 %v1103_v19  ;;  %vm217_vm13 = vcmp.eq.s32.totalorder %v1280_v51, %v193_v17 }
  0x97   :  { %v232_v21 = vsel %vm216_vm12, 1.0, %v1101_v5  ;;  %v233_v24 = vsel %vm217_vm13, 1.0, %v1101_v5 }
  0x98   :  { %925 = vmatmul.mubr.msk.f32.gmra.mrb[8].mxu0 %vm238_vm1, %v231_v20 }
  0x99   :  { %v199_v22 = vpop.permute.xlu1 %198  ;;  %v196_v23 = vpop.permute.xlu0 %195  ;;  %927 = vmatprep.mubr.msk.f32.mxu0 %vm238_vm1, %v232_v21 }
  0x9a   :  { %vm218_vm14 = vcmp.eq.s32.totalorder %v1280_v51, %v196_v23  ;;  %vm219_vm15 = vcmp.eq.s32.totalorder %v1280_v51, %v199_v22 }
  0x9b   :  { %v234_v25 = vsel %vm218_vm14, 1.0, %v1101_v5  ;;  %v235_v28 = vsel %vm219_vm15, 1.0, %v1101_v5 }
  0x9c   :  { %928 = vmatmul.mubr.msk.f32.gmra.mrb[10].mxu0 %vm238_vm1, %v233_v24 }
  0x9d   :  { %v205_v26 = vpop.permute.xlu1 %204  ;;  %v202_v27 = vpop.permute.xlu0 %201  ;;  %930 = vmatprep.mubr.msk.f32.mxu0 %vm238_vm1, %v234_v25 }
  0x9e   :  { %vm220_vm2 = vcmp.eq.s32.totalorder %v1280_v51, %v202_v27  ;;  %vm221_vm3 = vcmp.eq.s32.totalorder %v1280_v51, %v205_v26 }
  0x9f   :  { %v236_v29 = vsel %vm220_vm2, 1.0, %v1101_v5  ;;  %v237_v33 = vsel %vm221_vm3, 1.0, %v1101_v5 }
  0xa0   :  { %931 = vmatmul.mubr.msk.f32.gmra.mrb[12].mxu0 %vm238_vm1, %v235_v28 }
  0xa1   :  { %v67_v31 = vpop.permute.xlu1 %66  ;;  %v64_v32 = vpop.permute.xlu0 %63  ;;  %933 = vmatprep.mubr.msk.f32.mxu0 %vm238_vm1, %v236_v29  ;;  %v753_v29 = vld [vmem:[%s1452_s5] sm:$0xff] }
  0xa2   :  { %vm110_vm4 = vcmp.eq.s32.totalorder %v1280_v51, %v64_v32  ;;  %vm111_vm5 = vcmp.eq.s32.totalorder %v1280_v51, %v67_v31 }
  0xa3   :  { %v126_v34 = vsel %vm110_vm4, 1.0, %v1101_v5  ;;  %v127_v37 = vsel %vm111_vm5, 1.0, %v1101_v5 }
  0xa4   :  { %934 = vmatmul.mubr.msk.f32.gmra.mrb[14].mxu0 %vm238_vm1, %v237_v33 }
  0xa5   :  { %v73_v35 = vpop.permute.xlu1 %72  ;;  %v70_v36 = vpop.permute.xlu0 %69  ;;  %952 = vmatprep.mubr.msk.f32.mxu0 %vm238_vm1, %v126_v34 }
  0xa6   :  { %vm112_vm6 = vcmp.eq.s32.totalorder %v1280_v51, %v70_v36  ;;  %vm113_vm7 = vcmp.eq.s32.totalorder %v1280_v51, %v73_v35 }
  0xa7   :  { %v128_v38 = vsel %vm112_vm6, 1.0, %v1101_v5  ;;  %v129_v41 = vsel %vm113_vm7, 1.0, %v1101_v5 }
  0xa8   :  { %953 = vmatmul.mubr.msk.f32.vlgmr.msra.gmra.mrb[0].mxu0 %vm238_vm1, %v127_v37 }
  0xa9   :  { %v79_v39 = vpop.permute.xlu1 %78  ;;  %v76_v40 = vpop.permute.xlu0 %75  ;;  %955 = vmatprep.mubr.msk.f32.mxu0 %vm238_vm1, %v128_v38  ;;  %1049 = vmatpush3.bf16.msra.mxu0 %v1218_v30 }
  0xaa   :  { %vm114_vm8 = vcmp.eq.s32.totalorder %v1280_v51, %v76_v40  ;;  %1050 = vmatprep.subr.bf16.mxu0 %v1103_v19  ;;  %vm115_vm9 = vcmp.eq.s32.totalorder %v1280_v51, %v79_v39 }
  0xab   :  { %v130_v42 = vsel %vm114_vm8, 1.0, %v1101_v5  ;;  %v131_v30 = vsel %vm115_vm9, 1.0, %v1101_v5 }
  0xac   :  { %956 = vmatmul.mubr.msk.f32.gmra.mrb[2].mxu0 %vm238_vm1, %v129_v41 }
  0xad   :  { %v85_v43 = vpop.permute.xlu1 %84  ;;  %v82_v44 = vpop.permute.xlu0 %81  ;;  %958 = vmatprep.mubr.msk.f32.mxu0 %vm238_vm1, %v130_v42  ;;  %1052 = vmatpush3.bf16.msra.mxu0 %v1294_v60 }
  0xae   :  { %vm116_vm10 = vcmp.eq.s32.totalorder %v1280_v51, %v82_v44  ;;  %1053 = vmatprep.subr.bf16.mxu0 %v1103_v19  ;;  %vm117_vm11 = vcmp.eq.s32.totalorder %v1280_v51, %v85_v43 }
  0xaf   :  { %v132_v45 = vsel %vm116_vm10, 1.0, %v1101_v5  ;;  %v133_v48 = vsel %vm117_vm11, 1.0, %v1101_v5 }
  0xb0   :  { %959 = vmatmul.mubr.msk.f32.gmra.mrb[4].mxu0 %vm238_vm1, %v131_v30 }
  0xb1   :  { %v91_v46 = vpop.permute.xlu1 %90  ;;  %v88_v47 = vpop.permute.xlu0 %87  ;;  %961 = vmatprep.mubr.msk.f32.mxu0 %vm238_vm1, %v132_v45  ;;  %1055 = vmatpush3.bf16.msra.mxu0 %v1309_v2 }
  0xb2   :  { %vm118_vm12 = vcmp.eq.s32.totalorder %v1280_v51, %v88_v47  ;;  %1056 = vmatprep.subr.bf16.mxu0 %v1103_v19  ;;  %vm119_vm13 = vcmp.eq.s32.totalorder %v1280_v51, %v91_v46  ;;  %v770_v47 = vld [vmem:[%s1453_s6] sm:$0xff] }
  0xb3   :  { %v134_v49 = vsel %vm118_vm12, 1.0, %v1101_v5  ;;  %v135_v53 = vsel %vm119_vm13, 1.0, %v1101_v5 }
  0xb4   :  { %962 = vmatmul.mubr.msk.f32.gmra.mrb[6].mxu0 %vm238_vm1, %v133_v48 }
  0xb5   :  { %v97_v50 = vpop.permute.xlu1 %96  ;;  %v94_v52 = vpop.permute.xlu0 %93  ;;  %964 = vmatprep.mubr.msk.f32.mxu0 %vm238_vm1, %v134_v49  ;;  %1058 = vmatpush3.bf16.msra.mxu0 %v1325_v10 }
  0xb6   :  { %vm120_vm14 = vcmp.eq.s32.totalorder %v1280_v51, %v94_v52  ;;  %vm121_vm15 = vcmp.eq.s32.totalorder %v1280_v51, %v97_v50 }
  0xb7   :  { %v136_v54 = vsel %vm120_vm14, 1.0, %v1101_v5  ;;  %v137_v57 = vsel %vm121_vm15, 1.0, %v1101_v5 }
  0xb8   :  { %965 = vmatmul.mubr.msk.f32.gmra.mrb[8].mxu0 %vm238_vm1, %v135_v53 }
  0xb9   :  { %v103_v55 = vpop.permute.xlu1 %102  ;;  %v100_v56 = vpop.permute.xlu0 %99  ;;  %967 = vmatprep.mubr.msk.f32.mxu0 %vm238_vm1, %v136_v54 }
  0xba   :  { %vm122_vm2 = vcmp.eq.s32.totalorder %v1280_v51, %v100_v56  ;;  %vm123_vm3 = vcmp.eq.s32.totalorder %v1280_v51, %v103_v55 }
  0xbb   :  { %v138_v58 = vsel %vm122_vm2, 1.0, %v1101_v5  ;;  %v139_v61 = vsel %vm123_vm3, 1.0, %v1101_v5 }
  0xbc   :  { %968 = vmatmul.mubr.msk.f32.gmra.mrb[10].mxu0 %vm238_vm1, %v137_v57 }
  0xbd   :  { %v109_v59 = vpop.permute.xlu1 %108  ;;  %v106_v60 = vpop.permute.xlu0 %105  ;;  %970 = vmatprep.mubr.msk.f32.mxu0 %vm238_vm1, %v138_v58 }
  0xbe   :  { %vm124_vm4 = vcmp.eq.s32.totalorder %v1280_v51, %v106_v60  ;;  %vm125_vm5 = vcmp.eq.s32.totalorder %v1280_v51, %v109_v59 }
  0xbf   :  { %v140_v62 = vsel %vm124_vm4, 1.0, %v1101_v5  ;;  %v141_v0 = vsel %vm125_vm5, 1.0, %v1101_v5 }
  0xc0   :  { %971 = vmatmul.mubr.msk.f32.gmra.mrb[12].mxu0 %vm238_vm1, %v139_v61 }
  0xc1   :  { %v628_v63 = vpop.permute.xlu0 %627  ;;  %973 = vmatprep.mubr.msk.f32.mxu0 %vm238_vm1, %v140_v62 }
  0xc2   :  { %vm629_vm6 = vcmp.eq.s32.totalorder %v1280_v51, %v628_v63 }
  0xc3   :  { %v630_v1 = vsel %vm629_vm6, 1.0, %v1101_v5 }
  0xc4   :  { %974 = vmatmul.mubr.msk.f32.gmra.mrb[14].mxu0 %vm238_vm1, %v141_v0 }
  0xc5   :  { %992 = vmatprep.mubr.msk.f32.mxu0 %vm1102_vm0, %v1101_v5 }
  0xc8   :  { %993 = vmatmul.mubr.msk.f32.vlgmr.msra.gmra.mrb[16].mxu0 %vm238_vm1, %v630_v1 }
 0x17b   :  { %v954_v2 = vpop.f32.mrb[0].mxu0 }
 0x17c   :  { %v546_v3 = vpop.f32.mrb[1].mxu0 }
 0x17d   :  { %v705_v4 = vpack.c.bf16 %v954_v2, %v546_v3 }
 0x17f   :  { %v957_v6 = vpop.f32.mrb[2].mxu0  ;;  %996 = vmatpush3.bf16.xpose.msra.mxu1 %v705_v4 }
 0x180   :  { %v556_v7 = vpop.f32.mrb[3].mxu0  ;;  %997 = vmatprep.subr.bf16.mxu1 %v1101_v5 }
 0x181   :  { %v706_v8 = vpack.c.bf16 %v957_v6, %v556_v7 }
 0x183   :  { %v960_v9 = vpop.f32.mrb[4].mxu0 }
 0x184   :  { %v566_v51 = vpop.f32.mrb[5].mxu0 }
 0x185   :  { %v707_v10 = vpack.c.bf16 %v960_v9, %v566_v51 }
 0x187   :  { %v963_v11 = vpop.f32.mrb[6].mxu0  ;;  %998 = vmatpush3.bf16.xpose.msra.mxu1 %v706_v8 }
 0x188   :  { %v576_v12 = vpop.f32.mrb[7].mxu0  ;;  %999 = vmatprep.subr.bf16.mxu1 %v1101_v5 }
 0x189   :  { %v708_v13 = vpack.c.bf16 %v963_v11, %v576_v12 }
 0x18b   :  { %v966_v14 = vpop.f32.mrb[8].mxu0 }
 0x18c   :  { %v586_v15 = vpop.f32.mrb[9].mxu0 }
 0x18d   :  { %v709_v16 = vpack.c.bf16 %v966_v14, %v586_v15 }
 0x18f   :  { %v969_v17 = vpop.f32.mrb[10].mxu0  ;;  %1000 = vmatpush3.bf16.xpose.msra.mxu1 %v707_v10 }
 0x190   :  { %v596_v18 = vpop.f32.mrb[11].mxu0  ;;  %1001 = vmatprep.subr.bf16.mxu1 %v1101_v5 }
 0x191   :  { %v710_v19 = vpack.c.bf16 %v969_v17, %v596_v18 }
 0x193   :  { %v972_v20 = vpop.f32.mrb[12].mxu0 }
 0x194   :  { %v606_v21 = vpop.f32.mrb[13].mxu0 }
 0x195   :  { %v711_v22 = vpack.c.bf16 %v972_v20, %v606_v21 }
 0x197   :  { %v975_v23 = vpop.f32.mrb[14].mxu0  ;;  %1002 = vmatpush3.bf16.xpose.msra.mxu1 %v708_v13 }
 0x198   :  { %v616_v24 = vpop.f32.mrb[15].mxu0  ;;  %1003 = vmatprep.subr.bf16.mxu1 %v1101_v5 }
 0x199   :  { %v712_v25 = vpack.c.bf16 %v975_v23, %v616_v24 }
 0x19b   :  { %v700_v26 = vpop.f32.mrb[16].mxu0 }
 0x19c   :  { %v994_v27 = vpop.f32.mrb[17].mxu0  ;;  %v704_v28 = vpack.c.bf16 %v700_v26, %v700_v26 }
 0x19f   :  { %1004 = vmatpush3.bf16.xpose.msra.mxu1 %v709_v16 }
 0x1a0   :  { %1005 = vmatprep.subr.bf16.mxu1 %v1101_v5 }
 0x1a7   :  { %1006 = vmatpush3.bf16.xpose.msra.mxu1 %v710_v19 }
 0x1a8   :  { %1007 = vmatprep.subr.bf16.mxu1 %v1101_v5 }
 0x1af   :  { %1008 = vmatpush3.bf16.xpose.msra.mxu1 %v711_v22 }
 0x1b0   :  { %1009 = vmatprep.subr.bf16.mxu1 %v1101_v5 }
 0x1b7   :  { %1010 = vmatpush3.bf16.xpose.msra.mxu1 %v712_v25 }
 0x1be   :  { %1012 = vmatmul.mubr.bf16.vlgmr.msra.gmra.mrb[0].mxu1 %v704_v28 }
 0x291   :  { %v747_v31 = vpop.f32.mrb[0].mxu1 }
 0x292   :  { %v754_v32 = vmul.f32 %v753_v29, %v747_v31  ;;  %v1013_v33 = vpop.f32.mrb[1].mxu1 }
 0x293   :  { %v750_v34 = vpop.f32.mrb[2].mxu1 }
 0x294   :  { %v756_v35 = vand.u32 2147483647, %v754_v32  ;;  %v1014_v36 = vpop.f32.mrb[3].mxu1  ;;  %v755_v45 = vmin.f32 %v754_v32, 0.0 }
 0x296   :  { %v757_v37 = vsub.f32 0.0, %v756_v35 }
 0x298   :  { %v758_v38 = vmul.f32 1.442695, %v757_v37 }
 0x29a   :  { %1084 = vpow2.f32 %v758_v38 }
 0x2a4   :  { %v1085_v39 = vpop.eup %1084 }
 0x2a5   :  { %v760_v40 = vadd.f32 1.0, %v1085_v39  ;;  %v763_v5 = vmul.f32 -0.5, %v1085_v39  ;;  %v766_v42 = vand.u32 2147483647, %v1085_v39 }
 0x2a7   :  { %1086 = vlog2.f32 %v760_v40  ;;  %v764_v41 = vadd.f32 1.0, %v763_v5  ;;  %vm767_vm0 = vcmp.lt.f32.partialorder %v766_v42, 0.0004427343 }
 0x2a9   :  { %v765_v30 = vmul.f32 %v1085_v39, %v764_v41 }
 0x2b1   :  { %v1087_v43 = vpop.eup %1086 }
 0x2b2   :  { %v762_v44 = vmul.f32 0.6931472, %v1087_v43 }
 0x2b4   :  { %v768_v46 = vsel %vm767_vm0, %v765_v30, %v762_v44 }
 0x2b5   :  { %v769_v48 = vsub.f32 %v755_v45, %v768_v46 }
 0x2b7   :  { %v771_v49 = vmul.f32 %v770_v47, %v769_v48 }
 0x2b9   :  { %772 = vadd.xlane.f32.xlu1 %v771_v49 }
 0x346   :  { %v773_v50 = vpop.xlane.xlu1 %772 }
 0x347   :  { %v774_v52 = vrot.slane %v773_v50, 4 }
 0x349   :  { %v775_v53 = vadd.f32 %v774_v52, %v773_v50 }
 0x34b   :  { %v776_v54 = vrot.slane %v775_v53, 2 }
 0x34d   :  { %v777_v55 = vadd.f32 %v776_v54, %v775_v53 }
 0x34f   :  { %v778_v56 = vrot.slane %v777_v55, 1 }
 0x351   :  { %v779_v57 = vadd.f32 %v778_v56, %v777_v55 }
 0x353   :  { %1075 = vpush %v779_v57 }
 0x384   :  { %s1076_s25 = spop %1075 }
 0x385   :  { %s781_s26 = ssub.f32 0.0, %s1076_s25 }
 0x387   :  { %783 = sst [smem:[#allocation2]] %s781_s26 }
 0x388   :  { %1097 = shalt.err (!%p1094_p2)
}
 0x389   :  { %s1104_s10 = smov [#allocation2]  }
 0x38a   :  { %791 = dma.smem_to_hbm %s1104_s10, 16, %s1454_s7, [#allocation3]  }
 0x38b   :  { %1098 = dma.done.wait [#allocation3], 16  }
 0x38c   :  { %1099 = vsyncadd [#allocation3], 4294967280 }
 0x38d   :  { %795 = sfence }
 0x38e   :  { %796 = vsyncpa [#allocation3], 1 }

</bundles_post_ra>
